<compile_context>
chip_gen: v6e
topology: v6e:2x2x1
jax: 0.10.0
libtpu: 0.0.40
codegen_flags: <defaults>
</compile_context>

<pallas_src>
import functools

import jax
import jax.numpy as jnp
from jax import lax
from jax.experimental import pallas as pl
from jax.experimental.pallas import tpu as pltpu


def _round_up(a, m):
    return (a + m - 1) // m * m


def _projection_kernel(x_ref, w_ref, b_ref, o_ref,
                       acc_ref, logits_ref, m_ref, l_ref,
                       *, vocab, tv, nv, nk, mask_last_vocab_tile):
    v = pl.program_id(1)
    k = pl.program_id(2)

    # Fresh row tile: reset the online-softmax state.
    @pl.when((v == 0) & (k == 0))
    def _():
        m_ref[...] = jnp.full_like(m_ref, -jnp.inf)
        l_ref[...] = jnp.zeros_like(l_ref)

    # Start of the K reduction for this vocab tile.
    @pl.when(k == 0)
    def _():
        acc_ref[...] = jnp.zeros_like(acc_ref)

    # (tm, tk) x (tv, tk) -> (tm, tv): contract the last dims of both operands,
    # i.e. x @ W^T without ever transposing W in HBM.  MXU, f32 accumulation.
    acc_ref[...] += lax.dot_general(
        x_ref[...], w_ref[...],
        dimension_numbers=(((1,), (1,)), ((), ())),
        preferred_element_type=jnp.float32,
    )

    # K reduction finished for this vocab tile: online log-softmax update.
    @pl.when(k == nk - 1)
    def _():
        logits = acc_ref[...] + b_ref[...]          # bias already f32

        if mask_last_vocab_tile:
            # Columns >= vocab come from out-of-bounds weight/bias reads; mask them.
            col = v * tv + lax.broadcasted_iota(jnp.int32, logits.shape, 1)
            logits = jnp.where(col < vocab, logits, -1e30)

        m_prev = m_ref[...]
        m_new = jnp.maximum(m_prev, jnp.max(logits, axis=-1, keepdims=True))
        corr = jnp.exp(m_prev - m_new)
        l_ref[...] = l_ref[...] * corr + jnp.sum(
            jnp.exp(logits - m_new), axis=-1, keepdims=True)
        m_ref[...] = m_new

        # Stash raw f32 logits so the matmul never has to be recomputed.
        logits_ref[v] = logits

        # Last vocab tile: emit the whole (tm, vocab) log-softmax row block.
        @pl.when(v == nv - 1)
        def _():
            lse = m_ref[...] + jnp.log(l_ref[...])          # (tm, 1)
            for vi in range(nv):                            # static unroll
                lo = vi * tv
                hi = min(lo + tv, vocab)
                chunk = logits_ref[vi]
                if hi - lo != tv:
                    chunk = chunk[:, : hi - lo]
                o_ref[:, lo:hi] = (chunk - lse).astype(o_ref.dtype)


def projection_log_softmax(x, weight, bias, *, tm=None, tv=None, tk=None,
                           cast_compute_to_bf16=False):
    """log_softmax(x @ weight.T + bias, axis=-1).

    x:      (..., d_model)
    weight: (vocab, d_model)  -- PyTorch nn.Linear layout, used as-is (no transpose)
    bias:   (vocab,)
    """
    *lead, d_model = x.shape
    vocab, d_model_w = weight.shape
    assert d_model_w == d_model and bias.shape == (vocab,)

    x2d = x.reshape(-1, d_model)
    n = x2d.shape[0]
    out_dtype = x.dtype

    # ---------------- tile selection ----------------
    # Row tile: multiple of 8 sublanes, capped at 256 (MXU M fill, bounded VMEM).
    if tm is None:
        tm = min(256, _round_up(max(n, 1), 8))
    assert tm % 8 == 0 or tm == n

    # Vocab tile: stream the weight in lane-dense slabs; prefer an exact 128-multiple
    # divisor of vocab so no tile is ragged, else mask the last tile in-kernel.
    if tv is None:
        if vocab <= 2048:
            tv = vocab
        else:
            tv = 2048
            for cand in (2048, 1536, 1024, 768, 512, 384, 256, 128):
                if vocab % cand == 0:
                    tv = cand
                    break
    assert tv == vocab or tv % 128 == 0

    # K tile: exact divisors only (never a ragged contraction).
    if tk is None:
        tk = d_model
        if d_model > 4096:
            for cand in (2048, 1024, 512, 256, 128):
                if d_model % cand == 0:
                    tk = cand
                    break
    assert tk == d_model or (d_model % tk == 0 and tk % 128 == 0)

    nv = pl.cdiv(vocab, tv)
    nk = d_model // tk
    mask_last = (vocab % tv) != 0

    # ---------------- cheap host-side prep (never touches the weight) ----------------
    n_pad = _round_up(max(n, 1), tm)
    if n_pad != n:
        x2d = jnp.pad(x2d, ((0, n_pad - n), (0, 0)))
    b2d = bias.astype(jnp.float32).reshape(1, vocab)

    if cast_compute_to_bf16:
        # For production, store the weight in bf16 outside the jitted call so this
        # cast (a full HBM read+write of the weight) is not paid on every step.
        x2d = x2d.astype(jnp.bfloat16)
        weight = weight.astype(jnp.bfloat16)

    # ---------------- VMEM budget ----------------
    out_itemsize = jnp.dtype(out_dtype).itemsize
    est = (2 * tm * tk * x2d.dtype.itemsize          # x tiles (double buffered)
           + 2 * tv * tk * weight.dtype.itemsize     # weight tiles (double buffered)
           + 2 * tv * 4                              # bias tiles
           + 2 * tm * vocab * out_itemsize           # output block (resident)
           + tm * tv * 4                             # K accumulator
           + nv * tm * tv * 4                        # raw-logit slab
           + 4 * tm * 4)                             # running max / sum-exp
    vmem_limit = int(min(max(est * 5 // 4, 32 * 1024 * 1024), 100 * 1024 * 1024))

    kernel = functools.partial(
        _projection_kernel, vocab=vocab, tv=tv, nv=nv, nk=nk,
        mask_last_vocab_tile=mask_last)

    out2d = pl.pallas_call(
        kernel,
        out_shape=jax.ShapeDtypeStruct((n_pad, vocab), out_dtype),
        grid_spec=pltpu.PrefetchScalarGridSpec(
            num_scalar_prefetch=0,
            grid=(n_pad // tm, nv, nk),
            in_specs=[
                pl.BlockSpec((tm, tk), lambda i, v, k: (i, k)),   # activations
                pl.BlockSpec((tv, tk), lambda i, v, k: (v, k)),   # weight (PT layout)
                pl.BlockSpec((1, tv), lambda i, v, k: (0, v)),    # bias (f32)
            ],
            out_specs=pl.BlockSpec((tm, vocab), lambda i, v, k: (i, 0)),
            scratch_shapes=[
                pltpu.VMEM((tm, tv), jnp.float32),         # K accumulator
                pltpu.VMEM((nv, tm, tv), jnp.float32),     # raw-logit slab (row tile)
                pltpu.VMEM((tm, 1), jnp.float32),          # running max
                pltpu.VMEM((tm, 1), jnp.float32),          # running sum-exp
            ],
        ),
        compiler_params=pltpu.CompilerParams(
            dimension_semantics=("parallel", "arbitrary", "arbitrary"),
            vmem_limit_bytes=vmem_limit,
        ),
    )(x2d, weight, b2d)

    if n_pad != n:
        out2d = out2d[:n]
    return out2d.reshape(*lead, vocab)


def _reference(x, weight, bias):
    return jax.nn.log_softmax(x @ weight.T + bias, axis=-1)


if __name__ == "__main__":
    key = jax.random.PRNGKey(0)

    # --- Test 1: module-sized small problem (single-tile path) -----------------
    batch, seq, d_model, vocab = 2, 8, 32, 128
    k1, k2, k3, key = jax.random.split(key, 4)
    x = jax.random.normal(k1, (batch, seq, d_model), dtype=jnp.float32)
    bound = 1.0 / (d_model ** 0.5)
    weight = jax.random.uniform(k2, (vocab, d_model), jnp.float32, -bound, bound)
    bias = jax.random.uniform(k3, (vocab,), jnp.float32, -bound, bound)

    out = jax.block_until_ready(projection_log_softmax(x, weight, bias))
    ref = _reference(x, weight, bias)
    assert out.shape == (batch, seq, vocab)
    assert jnp.allclose(out, ref, atol=1e-4, rtol=1e-4), \
        float(jnp.max(jnp.abs(out - ref)))

    # --- Test 2: multi-tile path (row / vocab / K tiling + row padding) --------
    batch, seq, d_model, vocab = 3, 12, 256, 512     # n = 36 -> padded to 40 rows
    k1, k2, k3, key = jax.random.split(key, 4)
    x = jax.random.normal(k1, (batch, seq, d_model), dtype=jnp.float32)
    bound = 1.0 / (d_model ** 0.5)
    weight = jax.random.uniform(k2, (vocab, d_model), jnp.float32, -bound, bound)
    bias = jax.random.uniform(k3, (vocab,), jnp.float32, -bound, bound)

    out = jax.block_until_ready(
        projection_log_softmax(x, weight, bias, tm=8, tv=128, tk=128))
    ref = _reference(x, weight, bias)
    assert out.shape == (batch, seq, vocab)
    assert jnp.allclose(out, ref, atol=5e-3, rtol=5e-3), \
        float(jnp.max(jnp.abs(out - ref)))

    print("KERNEL_OK")
</pallas_src>

<mosaic_0001>
module attributes {stable_mosaic.version = 11 : i64} {
  func.func @_projection_kernel(%arg0: i32, %arg1: i32, %arg2: i32, %arg3: memref<16x32xf32, #tpu.memory_space<vmem>>, %arg4: memref<128x32xf32, #tpu.memory_space<vmem>>, %arg5: memref<1x128xf32, #tpu.memory_space<vmem>>, %arg6: memref<16x128xf32, #tpu.memory_space<vmem>>, %arg7: memref<16x128xf32, #tpu.memory_space<vmem>>, %arg8: memref<1x16x128xf32, #tpu.memory_space<vmem>>, %arg9: memref<16x1xf32, #tpu.memory_space<vmem>>, %arg10: memref<16x1xf32, #tpu.memory_space<vmem>>) attributes {dimension_semantics = [#tpu.dimension_semantics<parallel>, #tpu.dimension_semantics<arbitrary>, #tpu.dimension_semantics<arbitrary>], iteration_bounds = array<i64: 1, 1, 1>, scalar_prefetch = 0 : i64, scratch_operands = 4 : i64, tpu.core_type = #tpu.core_type<tc>, window_params = [{transform_indices = @transform_0, window_bounds = array<i64: 16, 32>}, {transform_indices = @transform_1, window_bounds = array<i64: 128, 32>}, {transform_indices = @transform_2, window_bounds = array<i64: 1, 128>}, {transform_indices = @transform_3, window_bounds = array<i64: 16, 128>}]} {
    %c0_i32 = arith.constant 0 : i32
    %0 = arith.cmpi eq, %arg1, %c0_i32 : i32
    %c0_i32_0 = arith.constant 0 : i32
    %1 = arith.cmpi eq, %arg2, %c0_i32_0 : i32
    %2 = arith.andi %0, %1 : i1
    %3 = arith.extui %2 : i1 to i32
    %c0_i32_1 = arith.constant 0 : i32
    %4 = arith.cmpi ne, %3, %c0_i32_1 : i32
    scf.if %4 {
      %cst_13 = arith.constant 0xFF800000 : f32
      %17 = vector.broadcast %cst_13 : f32 to vector<16x1xf32>
      %c0_14 = arith.constant 0 : index
      %c0_15 = arith.constant 0 : index
      %18 = vector.load %arg9[%c0_14, %c0_15] : memref<16x1xf32, #tpu.memory_space<vmem>>, vector<16x1xf32>
      tpu.vector_store %arg9[%c0_14, %c0_15], %17 {strides = array<i32>} : memref<16x1xf32, #tpu.memory_space<vmem>>, vector<16x1xf32>,
      %cst_16 = arith.constant 0.000000e+00 : f32
      %19 = vector.broadcast %cst_16 : f32 to vector<16x1xf32>
      %c0_17 = arith.constant 0 : index
      %c0_18 = arith.constant 0 : index
      %20 = vector.load %arg10[%c0_17, %c0_18] : memref<16x1xf32, #tpu.memory_space<vmem>>, vector<16x1xf32>
      tpu.vector_store %arg10[%c0_17, %c0_18], %19 {strides = array<i32>} : memref<16x1xf32, #tpu.memory_space<vmem>>, vector<16x1xf32>,
    } else {
    }
    %c0_i32_2 = arith.constant 0 : i32
    %5 = arith.cmpi eq, %arg2, %c0_i32_2 : i32
    %6 = arith.extui %5 : i1 to i32
    %c0_i32_3 = arith.constant 0 : i32
    %7 = arith.cmpi ne, %6, %c0_i32_3 : i32
    scf.if %7 {
      %cst_13 = arith.constant 0.000000e+00 : f32
      %17 = vector.broadcast %cst_13 : f32 to vector<16x128xf32>
      %c0_14 = arith.constant 0 : index
      %c0_15 = arith.constant 0 : index
      %18 = vector.load %arg7[%c0_14, %c0_15] : memref<16x128xf32, #tpu.memory_space<vmem>>, vector<16x128xf32>
      tpu.vector_store %arg7[%c0_14, %c0_15], %17 {strides = array<i32>} : memref<16x128xf32, #tpu.memory_space<vmem>>, vector<16x128xf32>,
    } else {
    }
    %c0 = arith.constant 0 : index
    %c0_4 = arith.constant 0 : index
    %8 = vector.load %arg7[%c0, %c0_4] : memref<16x128xf32, #tpu.memory_space<vmem>>, vector<16x128xf32>
    %c0_5 = arith.constant 0 : index
    %c0_6 = arith.constant 0 : index
    %9 = vector.load %arg3[%c0_5, %c0_6] : memref<16x32xf32, #tpu.memory_space<vmem>>, vector<16x32xf32>
    %c0_7 = arith.constant 0 : index
    %c0_8 = arith.constant 0 : index
    %10 = vector.load %arg4[%c0_7, %c0_8] : memref<128x32xf32, #tpu.memory_space<vmem>>, vector<128x32xf32>
    %cst = arith.constant dense<0.000000e+00> : vector<16x128xf32>
    %11 = tpu.matmul %9, %10, %cst {dimension_numbers = #tpu.dot_dimension_numbers<[1], [1], [0], [0], [0, 0, 1, 0], [], []>} : vector<16x32xf32>, vector<128x32xf32>, vector<16x128xf32> -> vector<16x128xf32>
    %12 = arith.addf %8, %11 : vector<16x128xf32>
    %c0_9 = arith.constant 0 : index
    %c0_10 = arith.constant 0 : index
    %13 = vector.load %arg7[%c0_9, %c0_10] : memref<16x128xf32, #tpu.memory_space<vmem>>, vector<16x128xf32>
    tpu.vector_store %arg7[%c0_9, %c0_10], %12 {strides = array<i32>} : memref<16x128xf32, #tpu.memory_space<vmem>>, vector<16x128xf32>,
    %c0_i32_11 = arith.constant 0 : i32
    %14 = arith.cmpi eq, %arg2, %c0_i32_11 : i32
    %15 = arith.extui %14 : i1 to i32
    %c0_i32_12 = arith.constant 0 : i32
    %16 = arith.cmpi ne, %15, %c0_i32_12 : i32
    scf.if %16 {
      %c0_13 = arith.constant 0 : index
      %c0_14 = arith.constant 0 : index
      %17 = vector.load %arg7[%c0_13, %c0_14] : memref<16x128xf32, #tpu.memory_space<vmem>>, vector<16x128xf32>
      %c0_15 = arith.constant 0 : index
      %c0_16 = arith.constant 0 : index
      %18 = vector.load %arg5[%c0_15, %c0_16] : memref<1x128xf32, #tpu.memory_space<vmem>>, vector<1x128xf32>
      %19 = vector.broadcast %18 : vector<1x128xf32> to vector<16x128xf32>
      %20 = arith.addf %17, %19 : vector<16x128xf32>
      %c0_17 = arith.constant 0 : index
      %c0_18 = arith.constant 0 : index
      %21 = vector.load %arg9[%c0_17, %c0_18] : memref<16x1xf32, #tpu.memory_space<vmem>>, vector<16x1xf32>
      %cst_19 = arith.constant dense<0xFF800000> : vector<16xf32>
      %22 = vector.multi_reduction <maximumf>, %20, %cst_19 [1] : vector<16x128xf32> to vector<16xf32>
      %23 = vector.shape_cast %22 : vector<16xf32> to vector<16x1xf32>
      %24 = arith.maximumf %21, %23 : vector<16x1xf32>
      %25 = arith.subf %21, %24 : vector<16x1xf32>
      %26 = math.exp %25 : vector<16x1xf32>
      %c0_20 = arith.constant 0 : index
      %c0_21 = arith.constant 0 : index
      %27 = vector.load %arg10[%c0_20, %c0_21] : memref<16x1xf32, #tpu.memory_space<vmem>>, vector<16x1xf32>
      %28 = arith.mulf %27, %26 : vector<16x1xf32>
      %29 = vector.broadcast %24 : vector<16x1xf32> to vector<16x128xf32>
      %30 = arith.subf %20, %29 : vector<16x128xf32>
      %31 = math.exp %30 : vector<16x128xf32>
      %cst_22 = arith.constant dense<0.000000e+00> : vector<16xf32>
      %32 = vector.multi_reduction <add>, %31, %cst_22 [1] : vector<16x128xf32> to vector<16xf32>
      %33 = vector.shape_cast %32 : vector<16xf32> to vector<16x1xf32>
      %34 = arith.addf %28, %33 : vector<16x1xf32>
      %c0_23 = arith.constant 0 : index
      %c0_24 = arith.constant 0 : index
      %35 = vector.load %arg10[%c0_23, %c0_24] : memref<16x1xf32, #tpu.memory_space<vmem>>, vector<16x1xf32>
      tpu.vector_store %arg10[%c0_23, %c0_24], %34 {strides = array<i32>} : memref<16x1xf32, #tpu.memory_space<vmem>>, vector<16x1xf32>,
      %c0_25 = arith.constant 0 : index
      %c0_26 = arith.constant 0 : index
      %36 = vector.load %arg9[%c0_25, %c0_26] : memref<16x1xf32, #tpu.memory_space<vmem>>, vector<16x1xf32>
      tpu.vector_store %arg9[%c0_25, %c0_26], %24 {strides = array<i32>} : memref<16x1xf32, #tpu.memory_space<vmem>>, vector<16x1xf32>,
      %37 = arith.index_cast %arg1 : i32 to index
      %c0_27 = arith.constant 0 : index
      %c0_28 = arith.constant 0 : index
      %38 = vector.load %arg8[%37, %c0_27, %c0_28] : memref<1x16x128xf32, #tpu.memory_space<vmem>>, vector<1x16x128xf32>
      %39 = vector.shape_cast %38 : vector<1x16x128xf32> to vector<16x128xf32>
      %40 = vector.shape_cast %20 : vector<16x128xf32> to vector<1x16x128xf32>
      tpu.vector_store %arg8[%37, %c0_27, %c0_28], %40 {strides = array<i32>} : memref<1x16x128xf32, #tpu.memory_space<vmem>>, vector<1x16x128xf32>,
      %c0_i32_29 = arith.constant 0 : i32
      %41 = arith.cmpi eq, %arg1, %c0_i32_29 : i32
      %42 = arith.extui %41 : i1 to i32
      %c0_i32_30 = arith.constant 0 : i32
      %43 = arith.cmpi ne, %42, %c0_i32_30 : i32
      scf.if %43 {
        %c0_31 = arith.constant 0 : index
        %c0_32 = arith.constant 0 : index
        %44 = vector.load %arg9[%c0_31, %c0_32] : memref<16x1xf32, #tpu.memory_space<vmem>>, vector<16x1xf32>
        %c0_33 = arith.constant 0 : index
        %c0_34 = arith.constant 0 : index
        %45 = vector.load %arg10[%c0_33, %c0_34] : memref<16x1xf32, #tpu.memory_space<vmem>>, vector<16x1xf32>
        %46 = math.log %45 : vector<16x1xf32>
        %47 = arith.addf %44, %46 : vector<16x1xf32>
        %c0_35 = arith.constant 0 : index
        %c0_36 = arith.constant 0 : index
        %c0_37 = arith.constant 0 : index
        %48 = vector.load %arg8[%c0_35, %c0_36, %c0_37] : memref<1x16x128xf32, #tpu.memory_space<vmem>>, vector<1x16x128xf32>
        %49 = vector.shape_cast %48 : vector<1x16x128xf32> to vector<16x128xf32>
        %50 = vector.broadcast %47 : vector<16x1xf32> to vector<16x128xf32>
        %51 = arith.subf %49, %50 : vector<16x128xf32>
        %c0_38 = arith.constant 0 : index
        %c0_39 = arith.constant 0 : index
        %52 = vector.load %arg6[%c0_38, %c0_39] : memref<16x128xf32, #tpu.memory_space<vmem>>, vector<16x128xf32>
        tpu.vector_store %arg6[%c0_38, %c0_39], %51 {strides = array<i32>} : memref<16x128xf32, #tpu.memory_space<vmem>>, vector<16x128xf32>,
      } else {
      }
    } else {
    }
    return
  }
  func.func @transform_0(%arg0: i32, %arg1: i32, %arg2: i32) -> (i32, i32) {
    %c0_i32 = arith.constant 0 : i32
    return %arg0, %arg2 : i32, i32
  }
  func.func @transform_1(%arg0: i32, %arg1: i32, %arg2: i32) -> (i32, i32) {
    %c0_i32 = arith.constant 0 : i32
    return %arg1, %arg2 : i32, i32
  }
  func.func @transform_2(%arg0: i32, %arg1: i32, %arg2: i32) -> (i32, i32) {
    %c0_i32 = arith.constant 0 : i32
    %c0_i32_0 = arith.constant 0 : i32
    return %c0_i32, %arg1 : i32, i32
  }
  func.func @transform_3(%arg0: i32, %arg1: i32, %arg2: i32) -> (i32, i32) {
    %c0_i32 = arith.constant 0 : i32
    %c0_i32_0 = arith.constant 0 : i32
    return %arg0, %c0_i32 : i32, i32
  }
}

</mosaic_0001>

<bundles_post_ra>
// kernel: tpu_custom_call.1
= control target key start
LH: loop header
LB: loop body
LE: loop exit
PB: predicated region body
PF: predicated region fallthrough
CT: control target
= control target key end

     0   :  { %vm51_vm0 = vcmask 261120   ;;  %s545_s0 = inlined_call_operand.vmem [shape: f32[16,32], index: 0, kind: input, shape index: {}]   ;;  %s546_s1 = inlined_call_operand.vmem [shape: f32[128,32], index: 1, kind: input, shape index: {}]   ;;  %s547_s2 = inlined_call_operand.vmem [shape: f32[1,128], index: 2, kind: input, shape index: {}]   ;;  %s548_s3 = inlined_call_operand.hbm [shape: f32[16,128], index: 3, kind: output, shape index: {}]  }
   0x1   :  { %v50_v0 = vld [vmem:[%s546_s1 + $0x78] sm:$0xff]  ;;  %v49_v1 = vld [vmem:[%s546_s1 + $0x70] sm:$0xff]  ;;  %v48_v2 = vld [vmem:[%s546_s1 + $0x68] sm:$0xff] }
   0x2   :  { %330 = vmatprep.subr.msk.mxu0 %vm51_vm0, %v50_v0  ;;  %v33_v3 = vld [vmem:[%s545_s0] sm:$0xff] }
   0x3   :  { %331 = vmatpush3.xpose.msk.msra.mxu0 %vm51_vm0, %v50_v0  ;;  %362 = vmatprep.mubr.msk.f32.mxu0 %vm51_vm0, %v33_v3 }
   0x4   :  { %332 = vmatprep.subr.msk.mxu0 %vm51_vm0, %v49_v1 }
   0x7   :  { %333 = vmatpush3.xpose.msk.msra.mxu0 %vm51_vm0, %v49_v1 }
   0x8   :  { %8 = vsyncpa [#allocation7], 0  ;;  %334 = vmatprep.subr.msk.mxu0 %vm51_vm0, %v48_v2  ;;  %v47_v4 = vld [vmem:[%s546_s1 + $0x60] sm:$0xff]  ;;  %v46_v5 = vld [vmem:[%s546_s1 + $0x58] sm:$0xff]  ;;  %vm21_vm1 = vcmask 7168   ;;  %v407_v23 = vmov -inf  }
   0x9   :  { %v45_v6 = vld [vmem:[%s546_s1 + $0x50] sm:$0xff]  ;;  %v44_v7 = vld [vmem:[%s546_s1 + $0x48] sm:$0xff]  ;;  %v43_v8 = vld [vmem:[%s546_s1 + $0x40] sm:$0xff]  ;;  %22 = vst.msk [vmem:[#allocation4] sm:$0xff] %vm21_vm1, %v407_v23  ;;  %v408_v24 = vmov 0   ;;  %v409_v25 = vmov 0.0  }
   0xa   :  { %v42_v9 = vld [vmem:[%s546_s1 + $0x38] sm:$0xff]  ;;  %v41_v10 = vld [vmem:[%s546_s1 + $0x30] sm:$0xff]  ;;  %v40_v11 = vld [vmem:[%s546_s1 + $0x28] sm:$0xff]  ;;  %23 = vst.msk [vmem:[#allocation4 + $0x8] sm:$0xff] %vm21_vm1, %v407_v23  ;;  %371 = vset.pattern.permute.xlu1 %v408_v24  ;;  %372 = vset.pattern.permute.xlu0 %v408_v24 }
   0xb   :  { %335 = vmatpush3.xpose.msk.msra.mxu0 %vm51_vm0, %v48_v2  ;;  %v39_v12 = vld [vmem:[%s546_s1 + $0x20] sm:$0xff]  ;;  %v38_v13 = vld [vmem:[%s546_s1 + $0x18] sm:$0xff]  ;;  %v37_v14 = vld [vmem:[%s546_s1 + $0x10] sm:$0xff]  ;;  %24 = vst.msk [vmem:[#allocation5] sm:$0xff] %vm21_vm1, %v409_v25 }
   0xc   :  { %336 = vmatprep.subr.msk.mxu0 %vm51_vm0, %v47_v4  ;;  %v36_v15 = vld [vmem:[%s546_s1 + $0x8] sm:$0xff]  ;;  %v35_v16 = vld [vmem:[%s546_s1] sm:$0xff]  ;;  %25 = vst.msk [vmem:[#allocation5 + $0x8] sm:$0xff] %vm21_vm1, %v409_v25 }
   0xd   :  { %v34_v17 = vld [vmem:[%s545_s0 + $0x8] sm:$0xff]  ;;  %v311_v19 = vld [vmem:[%s547_s2] ss:$0 sm:$0xff]  ;;  %s410_s0 = smov [#allocation6]  }
   0xe   :  { %s282_s1 = sshll.u32 %s410_s0, 4  ;;  %s283_s1 = int_to_ptr.vmem [resolvable:$true] %s282_s1 }
   0xf   :  { %337 = vmatpush3.xpose.msk.msra.mxu0 %vm51_vm0, %v47_v4  ;;  %s385_s2 = scalar_lea.vmem %s283_s1, 256  ;;  %p390_p1 = scmp.lt.s32.totalorder %s283_s1, %s283_s1 }
  0x10   :  { %338 = vmatprep.subr.msk.mxu0 %vm51_vm0, %v46_v5  ;;  %v199_v26 = vld [vmem:[#allocation4] sm:$0xff]  ;;  %p386_p0 = scmp.ne.s32.totalorder %s283_s1, %s385_s2  ;;  %p391_p2 = scmp.lt.s32.totalorder %s385_s2, %s385_s2 }
  0x11   :  { %v200_v29 = vld [vmem:[#allocation4 + $0x8] sm:$0xff] }
  0x12   :  { %v213_v45 = vld [vmem:[#allocation5] sm:$0xff]  ;;  %p392_p3 = por %p391_p2, %p390_p1 }
  0x13   :  { %339 = vmatpush3.xpose.msk.msra.mxu0 %vm51_vm0, %v46_v5  ;;  %v214_v49 = vld [vmem:[#allocation5 + $0x8] sm:$0xff] }
  0x14   :  { %340 = vmatprep.subr.msk.mxu0 %vm51_vm0, %v45_v6  ;;  %p393_p4 = pnand %p392_p3, %p386_p0 }
  0x17   :  { %341 = vmatpush3.xpose.msk.msra.mxu0 %vm51_vm0, %v45_v6 }
  0x18   :  { %342 = vmatprep.subr.msk.mxu0 %vm51_vm0, %v44_v7 }
  0x1b   :  { %343 = vmatpush3.xpose.msk.msra.mxu0 %vm51_vm0, %v44_v7 }
  0x1c   :  { %344 = vmatprep.subr.msk.mxu0 %vm51_vm0, %v43_v8 }
  0x1f   :  { %345 = vmatpush3.xpose.msk.msra.mxu0 %vm51_vm0, %v43_v8 }
  0x20   :  { %346 = vmatprep.subr.msk.mxu0 %vm51_vm0, %v42_v9 }
  0x23   :  { %347 = vmatpush3.xpose.msk.msra.mxu0 %vm51_vm0, %v42_v9 }
  0x24   :  { %348 = vmatprep.subr.msk.mxu0 %vm51_vm0, %v41_v10 }
  0x27   :  { %349 = vmatpush3.xpose.msk.msra.mxu0 %vm51_vm0, %v41_v10 }
  0x28   :  { %350 = vmatprep.subr.msk.mxu0 %vm51_vm0, %v40_v11 }
  0x2b   :  { %351 = vmatpush3.xpose.msk.msra.mxu0 %vm51_vm0, %v40_v11 }
  0x2c   :  { %352 = vmatprep.subr.msk.mxu0 %vm51_vm0, %v39_v12 }
  0x2f   :  { %353 = vmatpush3.xpose.msk.msra.mxu0 %vm51_vm0, %v39_v12 }
  0x30   :  { %354 = vmatprep.subr.msk.mxu0 %vm51_vm0, %v38_v13 }
  0x33   :  { %355 = vmatpush3.xpose.msk.msra.mxu0 %vm51_vm0, %v38_v13 }
  0x34   :  { %356 = vmatprep.subr.msk.mxu0 %vm51_vm0, %v37_v14 }
  0x37   :  { %357 = vmatpush3.xpose.msk.msra.mxu0 %vm51_vm0, %v37_v14 }
  0x38   :  { %358 = vmatprep.subr.msk.mxu0 %vm51_vm0, %v36_v15 }
  0x3b   :  { %359 = vmatpush3.xpose.msk.msra.mxu0 %vm51_vm0, %v36_v15 }
  0x3c   :  { %360 = vmatprep.subr.msk.mxu0 %vm51_vm0, %v35_v16 }
  0x3f   :  { %361 = vmatpush3.xpose.msk.msra.mxu0 %vm51_vm0, %v35_v16 }
  0x42   :  { %363 = vmatmul.mubr.msk.f32.vlgmr.msra.gmra.mxu0 %vm51_vm0, %v34_v17 }
 0x102   :  { %v364_v18 = vpop.f32.mrf.mxu0 }
 0x103   :  { %v527_v22 = vadd.f32 %v364_v18, %v311_v19 }
 0x104   :  { %v172_v20 = vpop.f32.mrf.mxu0 }
 0x105   :  { %v524_v21 = vadd.f32 %v311_v19, %v172_v20 }
 0x107   :  { %201 = vmax.xlane.f32.xlu0 %v524_v21 }
 0x10b   :  { %203 = vmax.xlane.f32.xlu0 %v527_v22 }
 0x190   :  { %v202_v27 = vpop.xlane.xlu0 %201 }
 0x191   :  { %v205_v28 = vmax.f32 %v199_v26, %v202_v27 }
 0x193   :  { %v207_v30 = vsub.f32 %v199_v26, %v205_v28  ;;  %242 = vst.msk [vmem:[#allocation4] sm:$0xff] %vm21_vm1, %v205_v28  ;;  %219 = vperm.xlu1 %371, %v205_v28  }
 0x194   :  { %v204_v31 = vpop.xlane.xlu0 %203 }
 0x195   :  { %v206_v32 = vmax.f32 %v200_v29, %v204_v31  ;;  %v209_v42 = vmul.f32 1.442695, %v207_v30 }
 0x197   :  { %v208_v33 = vsub.f32 %v200_v29, %v206_v32  ;;  %243 = vst.msk [vmem:[#allocation4 + $0x8] sm:$0xff] %vm21_vm1, %v206_v32  ;;  %224 = vperm.xlu1 %371, %v206_v32  }
 0x199   :  { %v211_v43 = vmul.f32 1.442695, %v208_v33 }
 0x19a   :  { %v251_v58 = vld [vmem:[#allocation4] sm:$0xff] }
 0x19e   :  { %v252_v62 = vld [vmem:[#allocation4 + $0x8] sm:$0xff] }
 0x20e   :  { %v220_v34 = vpop.permute.xlu1 %219 }
 0x20f   :  { %v227_v35 = vsub.f32 %v524_v21, %v220_v34 }
 0x211   :  { %v229_v36 = vmul.f32 1.442695, %v227_v35 }
 0x212   :  { %v225_v37 = vpop.permute.xlu1 %224 }
 0x213   :  { %373 = vpow2.f32 %v229_v36  ;;  %v228_v38 = vsub.f32 %v527_v22, %v225_v37 }
 0x215   :  { %v231_v39 = vmul.f32 1.442695, %v228_v38 }
 0x217   :  { %375 = vpow2.f32 %v231_v39 }
 0x218   :  { %377 = vpow2.f32 %v209_v42 }
 0x219   :  { %379 = vpow2.f32 %v211_v43 }
 0x220   :  { %v374_v40 = vpop.eup %373 }
 0x221   :  { %233 = vadd.xlane.f32.xlu0 %v374_v40 }
 0x224   :  { %v376_v41 = vpop.eup %375 }
 0x225   :  { %235 = vadd.xlane.f32.xlu1 %v376_v41  ;;  %v378_v44 = vpop.eup %377 }
 0x226   :  { %v215_v46 = vmul.f32 %v378_v44, %v213_v45  ;;  %v380_v47 = vpop.eup %379 }
 0x227   :  { %v216_v51 = vmul.f32 %v380_v47, %v214_v49 }
 0x2aa   :  { %v234_v48 = vpop.xlane.xlu0 %233 }
 0x2ab   :  { %v237_v50 = vadd.f32 %v234_v48, %v215_v46 }
 0x2ad   :  { %240 = vst.msk [vmem:[#allocation5] sm:$0xff] %vm21_vm1, %v237_v50 }
 0x2ae   :  { %v236_v52 = vpop.xlane.xlu1 %235 }
 0x2af   :  { %v238_v53 = vadd.f32 %v236_v52, %v216_v51 }
 0x2b1   :  { %241 = vst.msk [vmem:[#allocation5 + $0x8] sm:$0xff] %vm21_vm1, %v238_v53 }
 0x2b4   :  { %v253_v54 = vld [vmem:[#allocation5] sm:$0xff] }
 0x2b5   :  { %381 = vlog2.f32 %v253_v54 }
 0x2b8   :  { %v254_v55 = vld [vmem:[#allocation5 + $0x8] sm:$0xff] }
 0x2b9   :  { %383 = vlog2.f32 %v254_v55 }
 0x2c2   :  { %v382_v56 = vpop.eup %381 }
 0x2c3   :  { %v256_v57 = vmul.f32 0.6931472, %v382_v56 }
 0x2c5   :  { %v259_v59 = vadd.f32 %v256_v57, %v251_v58 }
 0x2c6   :  { %v384_v60 = vpop.eup %383 }
 0x2c7   :  { %265 = vperm.xlu0 %372, %v259_v59   ;;  %v258_v61 = vmul.f32 0.6931472, %v384_v60 }
 0x2c9   :  { %v260_v63 = vadd.f32 %v258_v61, %v252_v62 }
 0x2cb   :  { %270 = vperm.xlu1 %371, %v260_v63  }
 0x342   :  { %v266_v0 = vpop.permute.xlu0 %265 }
 0x343   :  { %v273_v1 = vsub.f32 %v524_v21, %v266_v0 }
 0x345   :  { %275 = vst [vmem:[#allocation6] sm:$0xff] %v273_v1 }
 0x346   :  { %v271_v2 = vpop.permute.xlu1 %270 }
 0x347   :  { %v274_v3 = vsub.f32 %v527_v22, %v271_v2 }
 0x349   :  { %276 = vst [vmem:[#allocation6 + $0x8] sm:$0xff] %v274_v3 }
 0x34a   :  { %396 = shalt.err (!%p393_p4)
}
 0x34b   :  { %s411_s23 = smov 128   ;;  %s412_s24 = smov 8  }
 0x34c   :  { %288 = dma.vmem_to_hbm [thread:$0]  %s283_s1, 256, %s548_s3, [#allocation7], %s411_s23, %s411_s23, %s412_s24  }
 0x34d   :  { %405 = dma.done.wait [#allocation7], 256  }
 0x34e   :  { %406 = vsyncadd [#allocation7], 4294967040 }
 0x34f   :  { %292 = vsyncpa [#allocation7], 1 }

</bundles_post_ra>
